<compile_context>
chip_gen: v7x
topology: tpu7x:2x2x1
jax: 0.10.0
libtpu: 0.0.40
codegen_flags: <defaults>
</compile_context>

<pallas_src>
import functools
import math

import jax
import jax.numpy as jnp
from jax.experimental import pallas as pl
from jax.experimental.pallas import tpu as pltpu


def _round_up(x, m):
    return ((x + m - 1) // m) * m


def _temporal_kernel(x_ref, w_ref, b_ref, out_ref, u_ref, *, c, k, dim, t_blk):
    """One (batch, t-tile) grid step.

    x_ref  : (c, t_blk + 2k) bf16 — replicate-halo'ed input window for this tile.
    w_ref  : (2*dim, k*c)    bf16 — fused [left; right] weights, tap-major/channel-minor.
    b_ref  : (2*dim, 1)      f32  — fused [left; right] biases.
    out_ref: (2*dim, t_blk)  f32  — [left ; right] features for this tile.
    u_ref  : (k*c, t_blk+k+1) bf16 VMEM scratch — the single shared im2col.
    """
    wu = t_blk + k + 1

    # Shared im2col: k lane-shifted slice-assignments (destination sublane offsets m*c
    # are aligned when c % 8 == 0). Left conv taps live at columns [0, t_blk), right
    # conv taps at columns [k+1, k+1+t_blk) of the same U.
    for m in range(k):
        u_ref[m * c:(m + 1) * c, :] = x_ref[:, m:m + wu]

    # Single fused MXU matmul with f32 accumulation.
    r = jnp.dot(w_ref[...], u_ref[...], preferred_element_type=jnp.float32)  # (2*dim, wu)
    bias = b_ref[...]                                                         # (2*dim, 1)

    out_ref[0:dim, :] = (r[0:dim, 0:t_blk] + bias[0:dim]).astype(out_ref.dtype)
    out_ref[dim:2 * dim, :] = (
        r[dim:2 * dim, k + 1:k + 1 + t_blk] + bias[dim:2 * dim]
    ).astype(out_ref.dtype)


def temporal_module_forward(x, params, *, t_block=None):
    """x: (b, c, t) — same layout as TemporalModule.forward(feats). Returns (b, 2c, t) f32."""
    B, c, t = x.shape
    k = int(params["kernel_size"])
    two_dim, kc = params["w"].shape
    dim = two_dim // 2
    assert kc == k * c, "flattened conv weight does not match (k * channels)"
    assert c % 8 == 0 and dim % 8 == 0, "channel dims should be multiples of 8 (sublane)"

    # Lane-dense t tile (multiple of 128), capped so x/out blocks + im2col fit VMEM.
    if t_block is None:
        t_block = min(512, _round_up(t, 128))
    t_blk = _round_up(t_block, 128)
    n_t = pl.cdiv(t, t_blk)
    T = n_t * t_blk
    win = t_blk + 2 * k            # haloed input window per tile
    wu = t_blk + k + 1             # shared im2col width

    # bf16 activations; weights were cast once in prepare_params.
    xb = x.astype(jnp.bfloat16)
    # Bake the PyTorch F.pad(mode='replicate') boundary handling (and right-pad up to T)
    # into the input once, then materialize per-tile haloed windows so every grid block
    # is a disjoint Blocked DMA (full auto-pipelining, no manual halo DMA).
    x_ext = jnp.pad(xb, ((0, 0), (0, 0), (k, (T - t) + k)), mode="edge")   # (B, c, T+2k)
    starts = jnp.arange(n_t) * t_blk
    idx = starts[:, None] + jnp.arange(win)[None, :]                       # (n_t, win)
    x_tiles = jnp.moveaxis(x_ext[:, :, idx], 1, 2)                         # (B, n_t, c, win)

    kernel = functools.partial(_temporal_kernel, c=c, k=k, dim=dim, t_blk=t_blk)

    # Advisory cost estimate + explicit VMEM budget (weights single-buffered,
    # x window / output tile double-buffered by the pipeline).
    flops = 2 * B * n_t * two_dim * kc * wu
    bytes_accessed = (int(x_tiles.size) * 2 + two_dim * kc * 2 + two_dim * 4
                      + B * two_dim * T * 4)
    vmem_need = (2 * c * win * 2            # x window (bf16, double-buffered)
                 + 2 * two_dim * t_blk * 4  # out tile (f32, double-buffered)
                 + two_dim * kc * 2         # fused weights (bf16, single-buffered)
                 + two_dim * 4              # bias
                 + kc * wu * 2              # shared im2col scratch (bf16)
                 + (2 << 20))               # headroom
    vmem_limit = int(min(max(vmem_need, 8 << 20), 64 << 20))

    out = pl.pallas_call(
        kernel,
        out_shape=jax.ShapeDtypeStruct((B, two_dim, T), jnp.float32),
        grid=(B, n_t),
        in_specs=[
            # per-(batch, t-tile) haloed input window; batch/tile dims squeezed
            pl.BlockSpec((None, None, c, win), lambda i, j: (i, j, 0, 0)),
            # fused [left; right] conv weight: constant index -> single-buffered
            pl.BlockSpec((two_dim, kc), lambda i, j: (0, 0),
                         pipeline_mode=pl.Buffered(1)),
            # fused [left; right] bias: constant index -> single-buffered
            pl.BlockSpec((two_dim, 1), lambda i, j: (0, 0),
                         pipeline_mode=pl.Buffered(1)),
        ],
        out_specs=pl.BlockSpec((None, two_dim, t_blk), lambda i, j: (i, 0, j)),
        scratch_shapes=[pltpu.VMEM((kc, wu), jnp.bfloat16)],
        compiler_params=pltpu.CompilerParams(
            dimension_semantics=("parallel", "parallel"),
            vmem_limit_bytes=vmem_limit),
        cost_estimate=pl.CostEstimate(flops=flops, transcendentals=0,
                                      bytes_accessed=bytes_accessed),
    )(x_tiles, params["w"], params["b"])

    return out if T == t else out[:, :, :t]


def prepare_params(raw):
    """One-time (hoisted) repack of PyTorch-layout parameters into the fused kernel layout.

    Conv1d weights (O, C, K) -> (O, K*C) (tap-major, channel-minor, matching the im2col
    row order built in-kernel); left/right stacked along output channels; cast to bf16.
    Biases stacked to a (2*O, 1) f32 column.
    """
    dim, c, k = raw["left_w"].shape

    def flat(w):
        return jnp.transpose(w, (0, 2, 1)).reshape(dim, k * c)

    w = jnp.concatenate([flat(raw["left_w"]), flat(raw["right_w"])], axis=0)   # (2*dim, k*c)
    b = jnp.concatenate([raw["left_b"], raw["right_b"]], axis=0).reshape(2 * dim, 1)
    return {
        "w": w.astype(jnp.bfloat16),
        "b": b.astype(jnp.float32),
        "kernel_size": k,
    }


def init_params(key, dim, k):
    """PyTorch-scale uniform init for the two Conv1d(dim, dim, k) layers."""
    ks = jax.random.split(key, 4)
    bound = 1.0 / math.sqrt(dim * k)
    return {
        "left_w": jax.random.uniform(ks[0], (dim, dim, k), jnp.float32, -bound, bound),
        "left_b": jax.random.uniform(ks[1], (dim,), jnp.float32, -bound, bound),
        "right_w": jax.random.uniform(ks[2], (dim, dim, k), jnp.float32, -bound, bound),
        "right_b": jax.random.uniform(ks[3], (dim,), jnp.float32, -bound, bound),
    }


def _reference_forward(x, raw, k, compute_dtype=jnp.float32):
    """Pure-JAX reference mirroring the PyTorch module (replicate pad + conv1d)."""
    b, c, t = x.shape
    xd = x.astype(compute_dtype)
    wl = raw["left_w"].astype(compute_dtype)
    wr = raw["right_w"].astype(compute_dtype)
    xp = jnp.pad(xd, ((0, 0), (0, 0), (k, k)), mode="edge")            # (b, c, t + 2k)
    idx = jnp.arange(k)[:, None] + jnp.arange(t)[None, :]              # (k, t)
    u_left = xp[:, :, idx]                                             # (b, c, k, t)
    u_right = xp[:, :, idx + k + 1]                                    # (b, c, k, t)
    left = jnp.einsum("ocm,bcmt->bot", wl, u_left,
                      preferred_element_type=jnp.float32) + raw["left_b"][None, :, None]
    right = jnp.einsum("ocm,bcmt->bot", wr, u_right,
                       preferred_element_type=jnp.float32) + raw["right_b"][None, :, None]
    return jnp.concatenate([left, right], axis=1)                      # (b, 2c, t)


if __name__ == "__main__":
    B, dim, t, k = 2, 32, 16, 8   # feats: (b, c, t); k_size = 8 as in the module
    key = jax.random.PRNGKey(0)
    k_x, k_p = jax.random.split(key)

    x = jax.random.normal(k_x, (B, dim, t), jnp.float32)
    raw_params = init_params(k_p, dim, k)
    params = prepare_params(raw_params)

    out = jax.block_until_ready(temporal_module_forward(x, params))
    assert out.shape == (B, 2 * dim, t)

    # Reference with the same bf16 input/weight quantization (f32 accumulation), so the
    # check isolates kernel correctness from the intentional bf16 cast.
    ref = _reference_forward(x, raw_params, k, compute_dtype=jnp.bfloat16)
    max_err = float(jnp.max(jnp.abs(out - ref)))
    assert max_err < 1e-2, f"Pallas output mismatch vs JAX reference (max_err={max_err})"

    print("KERNEL_OK")
</pallas_src>

<mosaic_0001>
module attributes {stable_mosaic.version = 11 : i64} {
  func.func @_temporal_kernel(%arg0: i32, %arg1: i32, %arg2: memref<1x1x32x144xbf16, #tpu.memory_space<vmem>>, %arg3: memref<64x256xbf16, #tpu.memory_space<vmem>>, %arg4: memref<64x1xf32, #tpu.memory_space<vmem>>, %arg5: memref<1x64x128xf32, #tpu.memory_space<vmem>>, %arg6: memref<256x137xbf16, #tpu.memory_space<vmem>>) attributes {dimension_semantics = [#tpu.dimension_semantics<parallel>, #tpu.dimension_semantics<parallel>], iteration_bounds = array<i64: 2, 1>, scalar_prefetch = 0 : i64, scratch_operands = 1 : i64, tpu.core_type = #tpu.core_type<tc>, window_params = [{transform_indices = @transform_0, window_bounds = array<i64: 1, 1, 32, 144>}, {pipeline_mode = #tpu.pipeline_mode<synchronous>, transform_indices = @transform_1, window_bounds = array<i64: 64, 256>}, {pipeline_mode = #tpu.pipeline_mode<synchronous>, transform_indices = @transform_2, window_bounds = array<i64: 64, 1>}, {transform_indices = @transform_3, window_bounds = array<i64: 1, 64, 128>}]} {
    %c0 = arith.constant 0 : index
    %c0_0 = arith.constant 0 : index
    %c0_1 = arith.constant 0 : index
    %c0_2 = arith.constant 0 : index
    %0 = vector.load %arg2[%c0, %c0_0, %c0_1, %c0_2] : memref<1x1x32x144xbf16, #tpu.memory_space<vmem>>, vector<1x1x32x137xbf16>
    %1 = vector.shape_cast %0 : vector<1x1x32x137xbf16> to vector<32x137xbf16>
    %c0_3 = arith.constant 0 : index
    %c0_4 = arith.constant 0 : index
    %2 = vector.load %arg6[%c0_3, %c0_4] : memref<256x137xbf16, #tpu.memory_space<vmem>>, vector<32x137xbf16>
    tpu.vector_store %arg6[%c0_3, %c0_4], %1 {strides = array<i32>} : memref<256x137xbf16, #tpu.memory_space<vmem>>, vector<32x137xbf16>,
    %c0_5 = arith.constant 0 : index
    %c0_6 = arith.constant 0 : index
    %c0_7 = arith.constant 0 : index
    %c1 = arith.constant 1 : index
    %3 = vector.load %arg2[%c0_5, %c0_6, %c0_7, %c1] : memref<1x1x32x144xbf16, #tpu.memory_space<vmem>>, vector<1x1x32x137xbf16>
    %4 = vector.shape_cast %3 : vector<1x1x32x137xbf16> to vector<32x137xbf16>
    %c32 = arith.constant 32 : index
    %c0_8 = arith.constant 0 : index
    %5 = vector.load %arg6[%c32, %c0_8] : memref<256x137xbf16, #tpu.memory_space<vmem>>, vector<32x137xbf16>
    tpu.vector_store %arg6[%c32, %c0_8], %4 {strides = array<i32>} : memref<256x137xbf16, #tpu.memory_space<vmem>>, vector<32x137xbf16>,
    %c0_9 = arith.constant 0 : index
    %c0_10 = arith.constant 0 : index
    %c0_11 = arith.constant 0 : index
    %c2 = arith.constant 2 : index
    %6 = vector.load %arg2[%c0_9, %c0_10, %c0_11, %c2] : memref<1x1x32x144xbf16, #tpu.memory_space<vmem>>, vector<1x1x32x137xbf16>
    %7 = vector.shape_cast %6 : vector<1x1x32x137xbf16> to vector<32x137xbf16>
    %c64 = arith.constant 64 : index
    %c0_12 = arith.constant 0 : index
    %8 = vector.load %arg6[%c64, %c0_12] : memref<256x137xbf16, #tpu.memory_space<vmem>>, vector<32x137xbf16>
    tpu.vector_store %arg6[%c64, %c0_12], %7 {strides = array<i32>} : memref<256x137xbf16, #tpu.memory_space<vmem>>, vector<32x137xbf16>,
    %c0_13 = arith.constant 0 : index
    %c0_14 = arith.constant 0 : index
    %c0_15 = arith.constant 0 : index
    %c3 = arith.constant 3 : index
    %9 = vector.load %arg2[%c0_13, %c0_14, %c0_15, %c3] : memref<1x1x32x144xbf16, #tpu.memory_space<vmem>>, vector<1x1x32x137xbf16>
    %10 = vector.shape_cast %9 : vector<1x1x32x137xbf16> to vector<32x137xbf16>
    %c96 = arith.constant 96 : index
    %c0_16 = arith.constant 0 : index
    %11 = vector.load %arg6[%c96, %c0_16] : memref<256x137xbf16, #tpu.memory_space<vmem>>, vector<32x137xbf16>
    tpu.vector_store %arg6[%c96, %c0_16], %10 {strides = array<i32>} : memref<256x137xbf16, #tpu.memory_space<vmem>>, vector<32x137xbf16>,
    %c0_17 = arith.constant 0 : index
    %c0_18 = arith.constant 0 : index
    %c0_19 = arith.constant 0 : index
    %c4 = arith.constant 4 : index
    %12 = vector.load %arg2[%c0_17, %c0_18, %c0_19, %c4] : memref<1x1x32x144xbf16, #tpu.memory_space<vmem>>, vector<1x1x32x137xbf16>
    %13 = vector.shape_cast %12 : vector<1x1x32x137xbf16> to vector<32x137xbf16>
    %c128 = arith.constant 128 : index
    %c0_20 = arith.constant 0 : index
    %14 = vector.load %arg6[%c128, %c0_20] : memref<256x137xbf16, #tpu.memory_space<vmem>>, vector<32x137xbf16>
    tpu.vector_store %arg6[%c128, %c0_20], %13 {strides = array<i32>} : memref<256x137xbf16, #tpu.memory_space<vmem>>, vector<32x137xbf16>,
    %c0_21 = arith.constant 0 : index
    %c0_22 = arith.constant 0 : index
    %c0_23 = arith.constant 0 : index
    %c5 = arith.constant 5 : index
    %15 = vector.load %arg2[%c0_21, %c0_22, %c0_23, %c5] : memref<1x1x32x144xbf16, #tpu.memory_space<vmem>>, vector<1x1x32x137xbf16>
    %16 = vector.shape_cast %15 : vector<1x1x32x137xbf16> to vector<32x137xbf16>
    %c160 = arith.constant 160 : index
    %c0_24 = arith.constant 0 : index
    %17 = vector.load %arg6[%c160, %c0_24] : memref<256x137xbf16, #tpu.memory_space<vmem>>, vector<32x137xbf16>
    tpu.vector_store %arg6[%c160, %c0_24], %16 {strides = array<i32>} : memref<256x137xbf16, #tpu.memory_space<vmem>>, vector<32x137xbf16>,
    %c0_25 = arith.constant 0 : index
    %c0_26 = arith.constant 0 : index
    %c0_27 = arith.constant 0 : index
    %c6 = arith.constant 6 : index
    %18 = vector.load %arg2[%c0_25, %c0_26, %c0_27, %c6] : memref<1x1x32x144xbf16, #tpu.memory_space<vmem>>, vector<1x1x32x137xbf16>
    %19 = vector.shape_cast %18 : vector<1x1x32x137xbf16> to vector<32x137xbf16>
    %c192 = arith.constant 192 : index
    %c0_28 = arith.constant 0 : index
    %20 = vector.load %arg6[%c192, %c0_28] : memref<256x137xbf16, #tpu.memory_space<vmem>>, vector<32x137xbf16>
    tpu.vector_store %arg6[%c192, %c0_28], %19 {strides = array<i32>} : memref<256x137xbf16, #tpu.memory_space<vmem>>, vector<32x137xbf16>,
    %c0_29 = arith.constant 0 : index
    %c0_30 = arith.constant 0 : index
    %c0_31 = arith.constant 0 : index
    %c7 = arith.constant 7 : index
    %21 = vector.load %arg2[%c0_29, %c0_30, %c0_31, %c7] : memref<1x1x32x144xbf16, #tpu.memory_space<vmem>>, vector<1x1x32x137xbf16>
    %22 = vector.shape_cast %21 : vector<1x1x32x137xbf16> to vector<32x137xbf16>
    %c224 = arith.constant 224 : index
    %c0_32 = arith.constant 0 : index
    %23 = vector.load %arg6[%c224, %c0_32] : memref<256x137xbf16, #tpu.memory_space<vmem>>, vector<32x137xbf16>
    tpu.vector_store %arg6[%c224, %c0_32], %22 {strides = array<i32>} : memref<256x137xbf16, #tpu.memory_space<vmem>>, vector<32x137xbf16>,
    %c0_33 = arith.constant 0 : index
    %c0_34 = arith.constant 0 : index
    %24 = vector.load %arg3[%c0_33, %c0_34] : memref<64x256xbf16, #tpu.memory_space<vmem>>, vector<64x256xbf16>
    %c0_35 = arith.constant 0 : index
    %c0_36 = arith.constant 0 : index
    %25 = vector.load %arg6[%c0_35, %c0_36] : memref<256x137xbf16, #tpu.memory_space<vmem>>, vector<256x137xbf16>
    %cst = arith.constant dense<0.000000e+00> : vector<64x137xf32>
    %26 = tpu.matmul %24, %25, %cst {dimension_numbers = #tpu.dot_dimension_numbers<[1], [0], [0], [1], [0, 0, 1, 1], [], []>} : vector<64x256xbf16>, vector<256x137xbf16>, vector<64x137xf32> -> vector<64x137xf32>
    %c0_37 = arith.constant 0 : index
    %c0_38 = arith.constant 0 : index
    %27 = vector.load %arg4[%c0_37, %c0_38] : memref<64x1xf32, #tpu.memory_space<vmem>>, vector<64x1xf32>
    %28 = vector.extract_strided_slice %26 {offsets = [0, 0], sizes = [32, 128], strides = [1, 1]} : vector<64x137xf32> to vector<32x128xf32>
    %29 = vector.extract_strided_slice %27 {offsets = [0, 0], sizes = [32, 1], strides = [1, 1]} : vector<64x1xf32> to vector<32x1xf32>
    %30 = vector.broadcast %29 : vector<32x1xf32> to vector<32x128xf32>
    %31 = arith.addf %28, %30 : vector<32x128xf32>
    %c0_39 = arith.constant 0 : index
    %c0_40 = arith.constant 0 : index
    %c0_41 = arith.constant 0 : index
    %32 = vector.load %arg5[%c0_39, %c0_40, %c0_41] : memref<1x64x128xf32, #tpu.memory_space<vmem>>, vector<1x32x128xf32>
    %33 = vector.shape_cast %32 : vector<1x32x128xf32> to vector<32x128xf32>
    %34 = vector.shape_cast %31 : vector<32x128xf32> to vector<1x32x128xf32>
    tpu.vector_store %arg5[%c0_39, %c0_40, %c0_41], %34 {strides = array<i32>} : memref<1x64x128xf32, #tpu.memory_space<vmem>>, vector<1x32x128xf32>,
    %35 = vector.extract_strided_slice %26 {offsets = [32, 9], sizes = [32, 128], strides = [1, 1]} : vector<64x137xf32> to vector<32x128xf32>
    %36 = vector.extract_strided_slice %27 {offsets = [32, 0], sizes = [32, 1], strides = [1, 1]} : vector<64x1xf32> to vector<32x1xf32>
    %37 = vector.broadcast %36 : vector<32x1xf32> to vector<32x128xf32>
    %38 = arith.addf %35, %37 : vector<32x128xf32>
    %c0_42 = arith.constant 0 : index
    %c32_43 = arith.constant 32 : index
    %c0_44 = arith.constant 0 : index
    %39 = vector.load %arg5[%c0_42, %c32_43, %c0_44] : memref<1x64x128xf32, #tpu.memory_space<vmem>>, vector<1x32x128xf32>
    %40 = vector.shape_cast %39 : vector<1x32x128xf32> to vector<32x128xf32>
    %41 = vector.shape_cast %38 : vector<32x128xf32> to vector<1x32x128xf32>
    tpu.vector_store %arg5[%c0_42, %c32_43, %c0_44], %41 {strides = array<i32>} : memref<1x64x128xf32, #tpu.memory_space<vmem>>, vector<1x32x128xf32>,
    return
  }
  func.func @transform_0(%arg0: i32, %arg1: i32) -> (i32, i32, i32, i32) {
    %c0_i32 = arith.constant 0 : i32
    %c0_i32_0 = arith.constant 0 : i32
    %c0_i32_1 = arith.constant 0 : i32
    return %arg0, %arg1, %c0_i32, %c0_i32_0 : i32, i32, i32, i32
  }
  func.func @transform_1(%arg0: i32, %arg1: i32) -> (i32, i32) {
    %c0_i32 = arith.constant 0 : i32
    %c0_i32_0 = arith.constant 0 : i32
    %c0_i32_1 = arith.constant 0 : i32
    return %c0_i32, %c0_i32_0 : i32, i32
  }
  func.func @transform_2(%arg0: i32, %arg1: i32) -> (i32, i32) {
    %c0_i32 = arith.constant 0 : i32
    %c0_i32_0 = arith.constant 0 : i32
    %c0_i32_1 = arith.constant 0 : i32
    return %c0_i32, %c0_i32_0 : i32, i32
  }
  func.func @transform_3(%arg0: i32, %arg1: i32) -> (i32, i32, i32) {
    %c0_i32 = arith.constant 0 : i32
    %c0_i32_0 = arith.constant 0 : i32
    return %arg0, %c0_i32, %arg1 : i32, i32, i32
  }
}

</mosaic_0001>

<bundles_post_ra>
// kernel: tpu_custom_call.1
= control target key start
LH: loop header
LB: loop body
LE: loop exit
PB: predicated region body
PF: predicated region fallthrough
CT: control target
= control target key end

     0   :  { %8 = vsyncpa [#allocation4], 0  ;;  %s1427_s0 = inlined_call_operand.vmem [shape: bf16[2,1,32,144], index: 0, kind: input, shape index: {}]   ;;  %s1428_s1 = inlined_call_operand.hbm [shape: bf16[64,256], index: 1, kind: input, shape index: {}]   ;;  %s1429_s2 = inlined_call_operand.vmem [shape: f32[64,1], index: 2, kind: input, shape index: {}]   ;;  %s1430_s3 = inlined_call_operand.hbm [shape: f32[2,64,128], index: 3, kind: output, shape index: {}]  }
   0x1   :  { %9 = vsyncpa [#allocation5], 0 }
   0x2   :  { %11 = vsyncpa [#allocation5 + $0x1], 0  ;;  %s1207_s12 = smov 0   ;;  %s1209_s13 = smov 0  }
   0x3   :  { %s1211_s14 = smov 0   ;;  %s1213_s15 = smov 0  }
   0x4   :  { %s1215_s16 = smov 0   ;;  %s1217_s17 = smov 0  }
   0x5 LB: > { %s872_s18 = sadd.s32 4294967295, %s1170_s17   ;;  %s873_s19 = sadd.s32 4294967294, %s1170_s17   ;;  %s1170_s17 = sphi %s1217_s17, %s17_s17   ;;  %s1166_s16 = sphi %s1215_s16, %s1448_s16   ;;  %s1162_s15 = sphi %s1213_s15, %s1447_s15   ;;  %s1158_s14 = sphi %s1211_s14, %s1446_s14   ;;  %s1154_s13 = sphi %s1209_s13, %s1445_s13   ;;  %s1150_s12 = sphi %s1207_s12, %s1444_s12  }
   0x6   : > { %s29_s20 = sadd.s32 1, %s1166_s16  ;;  %s108_s21 = sadd.s32 1, %s1158_s14 }
   0x7   : > { %p31_p0 = scmp.ge.s32.totalorder %s29_s20, 2  ;;  %p118_p1 = scmp.ne.s32.totalorder %s1158_s14, %s1154_s13 }
   0x8   : > { %p119_p2 = scmp.eq.s32.totalorder %s872_s18, 1  ;;  %p124_p3 = scmp.ne.s32.totalorder %s1154_s13, %s1150_s12 }
   0x9   : > { %s1450_s20 = smov (%p31_p0, %s29_s20), 0  ;;  %p125_p5 = scmp.eq.s32.totalorder %s873_s19, 1 }
   0xa   : > { %p1247_p4 = por %p119_p2, %p118_p1  ;;  %s103_s23 = ssub.s32 %s1166_s16, %s1450_s20 }
   0xb   : > { %p874_p6 = scmp.ge.s32.totalorder %s1170_s17, 1  ;;  %p106_p7 = scmp.eq.s32.totalorder %s103_s23, 0 }
   0xc   : > { %s1435_s22 = scalar_select %p1247_p4, 1, 0 }
   0xd   : > { %p1254_p8 = por %p125_p5, %p124_p3  ;;  %p132_p9 = scmp.lt.s32.totalorder %s1170_s17, 3 }
   0xe   : > { %s1260_s25 = scalar_select %p106_p7, %s1158_s14, %s108_s21  }
   0xf   : > { %s1436_s24 = scalar_select %p1254_p8, 1, 0 }
  0x10   : > { %p1262_p10 = pnand %p874_p6, %p132_p9  ;;  %p1266_p11 = scmp.eq.s32.totalorder %s872_s18, 0 }
  0x11   : > { %s1172_s28 = smov [#allocation3]   ;;  %s1060_s6 = scalar_lea.hbm %s1428_s1, 1024 }
  0x12   : > { %s1437_s26 = scalar_select %p1262_p10, 1, 0 }
  0x13   : > { %s1438_s27 = scalar_select %p1266_p11, 1, 0 }
  0x14   : > { %p967_p12 = pneg %p1262_p10  ;;  %s144_s29 = sshll.u32 %s1172_s28, 4  ;;  %s145_s29 = int_to_ptr.vmem [resolvable:$true] %s144_s29 }
  0x15   : > { %p1061_p0 = scmp.ne.s32.totalorder %s1428_s1, %s1060_s6  ;;  %p1067_p5 = scmp.lt.u32.totalorder %s1060_s6, %s1428_s1 }
  0x16   : > { %p1274_p13 = pnand %p1266_p11, %p967_p12 }
  0x18   : > { %p1062_p1 = pneg %p1274_p13 }
  0x1a   : > { %p1063_p2 = pnand %p1062_p1, %p1061_p0 }
  0x1c   : > { %p1064_p3 = pneg %p1063_p2 }
  0x1e   : > { %p1069_p6 = pnand %p1067_p5, %p1064_p3 }
  0x20   : > { %1072 = shalt.err (!%p1069_p6)
}
  0x21   : > { %s1073_s11 = scalar_lea.vmem %s145_s29, 1024  ;;  %p1081_p8 = scmp.lt.s32.totalorder %s145_s29, %s145_s29 }
  0x22   : > { %p1074_p7 = scmp.ne.s32.totalorder %s145_s29, %s1073_s11  ;;  %p1082_p4 = scmp.lt.s32.totalorder %s1073_s11, %s1073_s11 }
  0x24   : > { %p1076_p9 = pnand %p1074_p7, %p1062_p1  ;;  %p1083_p11 = por %p1082_p4, %p1081_p8 }
  0x26   : > { %p1077_p12 = pneg %p1076_p9 }
  0x28   : > { %p1084_p10 = pnand %p1083_p11, %p1077_p12 }
  0x2a   : > { %1087 = shalt.err (!%p1084_p10)
}
  0x2b   : > { %s1173_s18 = smov 128   ;;  %s1174_s19 = smov 8  }
  0x2c   : > { %970 = dma.hbm_to_vmem [thread:$0]  (!%p1274_p13), %s1428_s1, 1024, %s145_s29, [#allocation4], %s1173_s18, %s1173_s18, %s1174_s19  }
  0x2d   : > { %p1440_p0 = scmp.ne.s32.totalorder %s1437_s26, 0 }
  0x2e   : > { %p1441_p2 = scmp.ne.s32.totalorder (!%p1440_p0), %s1438_s27, 0 }
  0x2f   : > { %175 = sbr.rel (%p1440_p0) target bundleno = 603 (0x25b), region = 32 }
  0x36   : > { %1141 = dma.done.wait (%p1441_p2), [#allocation4], 1024  }
  0x37   : > { %1143 = vsyncadd (%p1441_p2), [#allocation4], 4294966272  ;;  %p203_p4 = scmp.lt.s32.totalorder %s1162_s15, 1  ;;  %vm237_vm0 = vcmask 72704   ;;  %s1175_s26 = smov 127   ;;  %v667_v8 = vld [vmem:[%s1429_s2 + $0x20] sm:$0xff] }
  0x38   : > { %s1176_s27 = smov 126   ;;  %s1177_s29 = smov 125   ;;  %v1050_v6 = vld [vmem:[#allocation3 + $0x4] ss:$8 sps:$4 sm:$0xff]   ;;  %v1182_v10 = vmov 0   ;;  %v670_v11 = vld [vmem:[%s1429_s2 + $0x38] sm:$0xff] }
  0x39   : > { %s204_s28 = scalar_select %p203_p4, %s1162_s15, 1  ;;  %v1053_v7 = vld [vmem:[#allocation3 + $0x24] ss:$8 sps:$4 sm:$0xff]   ;;  %626 = vmatprep.mubr.bf16.mxu0 %v1050_v6  ;;  %1040 = vset.pattern.permute.xlu0 %v1182_v10  ;;  %v669_v12 = vld [vmem:[%s1429_s2 + $0x30] sm:$0xff]  ;;  %v666_v15 = vld [vmem:[%s1429_s2 + $0x18] sm:$0xff]  ;;  %vm269_vm1 = vcmask 1039360  }
  0x3a   : > { %s1178_s7 = smov 124   ;;  %s1179_s8 = smov 123   ;;  %642 = vmatprep.mubr.bf16.mxu1 %v1053_v7  ;;  %v668_v9 = vld [vmem:[%s1429_s2 + $0x28] sm:$0xff]  ;;  %1041 = vset.pattern.permute.xlu1 %v1182_v10  ;;  %v663_v14 = vld [vmem:[%s1429_s2] sm:$0xff]  ;;  %v665_v16 = vld [vmem:[%s1429_s2 + $0x10] sm:$0xff]  ;;  %vm308_vm2 = vcmask 1031168  }
  0x3b   : > { %s927_s4 = sshll.u32 %s204_s28, 5  ;;  %s1180_s9 = smov 122   ;;  %v664_v13 = vld [vmem:[%s1429_s2 + $0x8] sm:$0xff]  ;;  %vm347_vm3 = vcmask 1022976   ;;  %vm386_vm4 = vcmask 1014784   ;;  %vm425_vm5 = vcmask 1006592  }
  0x3c   : > { %s211_s6 = scalar_lea.vmem %s1427_s0, %s927_s4  ;;  %s1181_s10 = smov 121   ;;  %vm464_vm6 = vcmask 998400   ;;  %vm503_vm7 = vcmask 990208   ;;  %v1051_v10 = vld [vmem:[#allocation3 + $0x20] ss:$8 sps:$4 sm:$0xff]   ;;  %vm751_vm8 = vcmask 973824  }
  0x3d   : > { %v1042_v0 = vld [vmem:[%s211_s6 + $0x10] ss:$8 sps:$4 sm:$0xff]   ;;  %v1044_v1 = vld [vmem:[%s211_s6 + $0x14] ss:$8 sps:$4 sm:$0xff]   ;;  %v1045_v2 = vld [vmem:[%s211_s6] ss:$8 sps:$4 sm:$0xff]  }
  0x3e   : > { %265 = vrot.lane.b32.xlu1 %v1042_v0, %s1175_s26  ;;  %v1047_v3 = vld [vmem:[%s211_s6 + $0x4] ss:$8 sps:$4 sm:$0xff]   ;;  %240 = vst.msk [vmem:[#allocation2 + $0x18] sm:$0xff] %vm237_vm0, %v1044_v1  ;;  %261 = vrot.lane.b32.xlu0 %v1045_v2, %s1175_s26  ;;  %s1183_s19 = smov 119   ;;  %s928_s23 = sshll.u32 %s1162_s15, 10 }
  0x3f   : > { %238 = vst.msk [vmem:[#allocation2 + $0x8] sm:$0xff] %vm237_vm0, %v1047_v3  ;;  %s1375_s5 = scalar_lea.hbm %s1430_s3, %s928_s23  ;;  %p1442_p10 = scmp.ne.s32.totalorder %s1435_s22, 0 }
  0x40   : > { %s1184_s6 = smov [#allocation6]  }
  0x42   : > { %267 = vrot.lane.b32.xlu1 %v1044_v1, %s1175_s26  ;;  %263 = vrot.lane.b32.xlu0 %v1047_v3, %s1175_s26  ;;  %s1092_s26 = sshll.u32 %s1184_s6, 4  ;;  %s1093_s26 = int_to_ptr.vmem [resolvable:$false] %s1092_s26 }
  0x45   : > { %v525_v5 = vld [vmem:[#allocation2 + $0x18] sm:$0xff] }
  0x46   : > { %302 = vrot.lane.b32.xlu1 %v1047_v3, %s1176_s27  ;;  %v523_v4 = vld [vmem:[#allocation2 + $0x8] sm:$0xff]  ;;  %300 = vrot.lane.b32.xlu0 %v1045_v2, %s1176_s27 }
  0x47   : > { %594 = vmatprep.subr.bf16.mxu0 %v523_v4  ;;  %929 = vmatprep.subr.bf16.mxu1 %v523_v4 }
  0x48   : > { %595 = vmatpush1.bf16.msra.mxu0 %v1045_v2  ;;  %945 = vmatpush1.bf16.msra.mxu1 %v1045_v2 }
  0x49   : > { %596 = vmatprep.subr.bf16.mxu0 %v525_v5  ;;  %930 = vmatprep.subr.bf16.mxu1 %v525_v5 }
  0x4a   : > { %306 = vrot.lane.b32.xlu1 %v1044_v1, %s1176_s27  ;;  %304 = vrot.lane.b32.xlu0 %v1042_v0, %s1176_s27  ;;  %s1094_s27 = scalar_lea.vmem %s1093_s26, 2048 }
  0x4c   : > { %597 = vmatpush1.bf16.msra.mxu0 %v1042_v0  ;;  %946 = vmatpush1.bf16.msra.mxu1 %v1042_v0 }
  0x4e   : > { %341 = vrot.lane.b32.xlu1 %v1047_v3, %s1177_s29  ;;  %339 = vrot.lane.b32.xlu0 %v1045_v2, %s1177_s29 }
  0x52   : > { %345 = vrot.lane.b32.xlu1 %v1044_v1, %s1177_s29  ;;  %343 = vrot.lane.b32.xlu0 %v1042_v0, %s1177_s29 }
  0x56   : > { %380 = vrot.lane.b32.xlu1 %v1047_v3, %s1178_s7  ;;  %378 = vrot.lane.b32.xlu0 %v1045_v2, %s1178_s7 }
  0x5a   : > { %384 = vrot.lane.b32.xlu1 %v1044_v1, %s1178_s7  ;;  %382 = vrot.lane.b32.xlu0 %v1042_v0, %s1178_s7 }
  0x5e   : > { %419 = vrot.lane.b32.xlu1 %v1047_v3, %s1179_s8  ;;  %417 = vrot.lane.b32.xlu0 %v1045_v2, %s1179_s8 }
  0x62   : > { %423 = vrot.lane.b32.xlu1 %v1044_v1, %s1179_s8  ;;  %421 = vrot.lane.b32.xlu0 %v1042_v0, %s1179_s8 }
  0x66   : > { %458 = vrot.lane.b32.xlu1 %v1047_v3, %s1180_s9  ;;  %456 = vrot.lane.b32.xlu0 %v1045_v2, %s1180_s9 }
  0x6a   : > { %462 = vrot.lane.b32.xlu1 %v1044_v1, %s1180_s9  ;;  %460 = vrot.lane.b32.xlu0 %v1042_v0, %s1180_s9 }
  0x6e   : > { %497 = vrot.lane.b32.xlu1 %v1047_v3, %s1181_s10  ;;  %495 = vrot.lane.b32.xlu0 %v1045_v2, %s1181_s10 }
  0x72   : > { %501 = vrot.lane.b32.xlu1 %v1044_v1, %s1181_s10  ;;  %499 = vrot.lane.b32.xlu0 %v1042_v0, %s1181_s10  ;;  %s200_s10 = sand.u32 1, %s1154_s13  }
  0x73   : > { %s879_s11 = sshll.u32 %s200_s10, 6  ;;  %s1381_s15 = scalar_lea.sflag [#allocation5], %s200_s10 }
  0x74   : > { %s1348_s18 = scalar_lea.vmem [#allocation6], %s879_s11 }
  0x75   : > { %s779_s21 = sshll.u32 %s1348_s18, 4  ;;  %s1370_s21 = int_to_ptr.vmem [resolvable:$true] %s779_s21 }
  0x76   : > { %701 = vperm.xlu0 %1040, %v667_v8   ;;  %706 = vperm.xlu1 %1041, %v668_v9   ;;  %v1048_v9 = vld [vmem:[#allocation3] ss:$8 sps:$4 sm:$0xff]   ;;  %s1088_s30 = scalar_lea.vmem %s1370_s21, 1024  ;;  %p1095_p1 = scmp.lt.s32.totalorder %s1370_s21, %s1093_s26 }
  0x77   : > { %p1089_p8 = scmp.ne.s32.totalorder %s1370_s21, %s1088_s30  ;;  %p1096_p3 = scmp.lt.s32.totalorder %s1094_s27, %s1088_s30 }
  0x79   : > { %p1090_p11 = pnand %p1089_p8, %p1442_p10  ;;  %p1097_p5 = por %p1096_p3, %p1095_p1 }
  0x7a   : > { %716 = vperm.xlu0 %1040, %v670_v11   ;;  %711 = vperm.xlu1 %1041, %v669_v12   ;;  %v1054_v11 = vld [vmem:[#allocation3 + $0x14] ss:$8 sps:$4 sm:$0xff]  }
  0x7b   : > { %v1056_v12 = vld [vmem:[#allocation3 + $0x34] ss:$8 sps:$4 sm:$0xff]   ;;  %p1091_p13 = pneg %p1090_p11 }
  0x7d   : > { %p1098_p6 = pnand %p1097_p5, %p1091_p13 }
  0x7e   : > { %678 = vperm.xlu0 %1040, %v664_v13   ;;  %673 = vperm.xlu1 %1041, %v663_v14   ;;  %v1058_v13 = vld [vmem:[#allocation3 + $0x10] ss:$8 sps:$4 sm:$0xff]  }
  0x7f   : > { %v1059_v14 = vld [vmem:[#allocation3 + $0x30] ss:$8 sps:$4 sm:$0xff]  }
  0x82   : > { %688 = vperm.xlu0 %1040, %v666_v15   ;;  %683 = vperm.xlu1 %1041, %v665_v16  }
  0xb0   : > { %v266_v17 = vpop.permute.xlu1 %265  ;;  %v262_v18 = vpop.permute.xlu0 %261 }
  0xb4   : > { %v268_v19 = vpop.permute.xlu1 %267  ;;  %v264_v21 = vpop.permute.xlu0 %263 }
  0xb5   : > { %v271_v20 = vsel %vm269_vm1, %v266_v17, %v268_v19  ;;  %279 = vst.msk [vmem:[#allocation2 + $0x38] sm:$0xff] %vm237_vm0, %v268_v19  ;;  %v270_v22 = vsel %vm269_vm1, %v262_v18, %v264_v21  ;;  %277 = vst.msk [vmem:[#allocation2 + $0x28] sm:$0xff] %vm237_vm0, %v264_v21 }
  0xb8   : > { %v303_v23 = vpop.permute.xlu1 %302  ;;  %v301_v24 = vpop.permute.xlu0 %300 }
  0xb9   : > { %316 = vst.msk [vmem:[#allocation2 + $0x48] sm:$0xff] %vm237_vm0, %v303_v23  ;;  %v309_v25 = vsel %vm308_vm2, %v301_v24, %v303_v23 }
  0xbc   : > { %v307_v26 = vpop.permute.xlu1 %306  ;;  %v527_v27 = vld [vmem:[#allocation2 + $0x28] sm:$0xff]  ;;  %v305_v28 = vpop.permute.xlu0 %304  ;;  %v529_v29 = vld [vmem:[#allocation2 + $0x38] sm:$0xff] }
  0xbd   : > { %318 = vst.msk [vmem:[#allocation2 + $0x58] sm:$0xff] %vm237_vm0, %v307_v26  ;;  %598 = vmatprep.subr.bf16.mxu0 %v527_v27  ;;  %931 = vmatprep.subr.bf16.mxu1 %v527_v27  ;;  %v310_v30 = vsel %vm308_vm2, %v305_v28, %v307_v26 }
  0xbe   : > { %599 = vmatpush1.bf16.msra.mxu0 %v270_v22  ;;  %947 = vmatpush1.bf16.msra.mxu1 %v270_v22 }
  0xbf   : > { %600 = vmatprep.subr.bf16.mxu0 %v529_v29  ;;  %932 = vmatprep.subr.bf16.mxu1 %v529_v29 }
  0xc0   : > { %v342_v31 = vpop.permute.xlu1 %341  ;;  %v340_v32 = vpop.permute.xlu0 %339  ;;  %v531_v33 = vld [vmem:[#allocation2 + $0x48] sm:$0xff] }
  0xc1   : > { %355 = vst.msk [vmem:[#allocation2 + $0x68] sm:$0xff] %vm237_vm0, %v342_v31  ;;  %v348_v34 = vsel %vm347_vm3, %v340_v32, %v342_v31 }
  0xc2   : > { %601 = vmatpush1.bf16.msra.mxu0 %v271_v20  ;;  %948 = vmatpush1.bf16.msra.mxu1 %v271_v20 }
  0xc3   : > { %602 = vmatprep.subr.bf16.mxu0 %v531_v33  ;;  %933 = vmatprep.subr.bf16.mxu1 %v531_v33 }
  0xc4   : > { %v346_v35 = vpop.permute.xlu1 %345  ;;  %v344_v36 = vpop.permute.xlu0 %343  ;;  %v533_v37 = vld [vmem:[#allocation2 + $0x58] sm:$0xff] }
  0xc5   : > { %357 = vst.msk [vmem:[#allocation2 + $0x78] sm:$0xff] %vm237_vm0, %v346_v35  ;;  %v349_v38 = vsel %vm347_vm3, %v344_v36, %v346_v35 }
  0xc6   : > { %603 = vmatpush1.bf16.msra.mxu0 %v309_v25  ;;  %949 = vmatpush1.bf16.msra.mxu1 %v309_v25 }
  0xc7   : > { %604 = vmatprep.subr.bf16.mxu0 %v533_v37  ;;  %934 = vmatprep.subr.bf16.mxu1 %v533_v37 }
  0xc8   : > { %v381_v39 = vpop.permute.xlu1 %380  ;;  %v379_v40 = vpop.permute.xlu0 %378  ;;  %v535_v41 = vld [vmem:[#allocation2 + $0x68] sm:$0xff] }
  0xc9   : > { %394 = vst.msk [vmem:[#allocation2 + $0x88] sm:$0xff] %vm237_vm0, %v381_v39  ;;  %v387_v42 = vsel %vm386_vm4, %v379_v40, %v381_v39 }
  0xca   : > { %605 = vmatpush1.bf16.msra.mxu0 %v310_v30  ;;  %950 = vmatpush1.bf16.msra.mxu1 %v310_v30 }
  0xcb   : > { %606 = vmatprep.subr.bf16.mxu0 %v535_v41  ;;  %935 = vmatprep.subr.bf16.mxu1 %v535_v41 }
  0xcc   : > { %v385_v43 = vpop.permute.xlu1 %384  ;;  %v383_v44 = vpop.permute.xlu0 %382  ;;  %v537_v45 = vld [vmem:[#allocation2 + $0x78] sm:$0xff] }
  0xcd   : > { %396 = vst.msk [vmem:[#allocation2 + $0x98] sm:$0xff] %vm237_vm0, %v385_v43  ;;  %v388_v46 = vsel %vm386_vm4, %v383_v44, %v385_v43 }
  0xce   : > { %607 = vmatpush1.bf16.msra.mxu0 %v348_v34  ;;  %951 = vmatpush1.bf16.msra.mxu1 %v348_v34 }
  0xcf   : > { %608 = vmatprep.subr.bf16.mxu0 %v537_v45  ;;  %936 = vmatprep.subr.bf16.mxu1 %v537_v45 }
  0xd0   : > { %v420_v47 = vpop.permute.xlu1 %419  ;;  %v418_v48 = vpop.permute.xlu0 %417  ;;  %v539_v49 = vld [vmem:[#allocation2 + $0x88] sm:$0xff] }
  0xd1   : > { %433 = vst.msk [vmem:[#allocation2 + $0xa8] sm:$0xff] %vm237_vm0, %v420_v47  ;;  %v426_v50 = vsel %vm425_vm5, %v418_v48, %v420_v47 }
  0xd2   : > { %609 = vmatpush1.bf16.msra.mxu0 %v349_v38  ;;  %952 = vmatpush1.bf16.msra.mxu1 %v349_v38 }
  0xd3   : > { %610 = vmatprep.subr.bf16.mxu0 %v539_v49  ;;  %937 = vmatprep.subr.bf16.mxu1 %v539_v49 }
  0xd4   : > { %v424_v51 = vpop.permute.xlu1 %423  ;;  %v422_v52 = vpop.permute.xlu0 %421  ;;  %v541_v53 = vld [vmem:[#allocation2 + $0x98] sm:$0xff] }
  0xd5   : > { %435 = vst.msk [vmem:[#allocation2 + $0xb8] sm:$0xff] %vm237_vm0, %v424_v51  ;;  %v427_v54 = vsel %vm425_vm5, %v422_v52, %v424_v51 }
  0xd6   : > { %611 = vmatpush1.bf16.msra.mxu0 %v387_v42  ;;  %953 = vmatpush1.bf16.msra.mxu1 %v387_v42 }
  0xd7   : > { %612 = vmatprep.subr.bf16.mxu0 %v541_v53  ;;  %938 = vmatprep.subr.bf16.mxu1 %v541_v53 }
  0xd8   : > { %v459_v55 = vpop.permute.xlu1 %458  ;;  %v457_v56 = vpop.permute.xlu0 %456  ;;  %v543_v57 = vld [vmem:[#allocation2 + $0xa8] sm:$0xff] }
  0xd9   : > { %472 = vst.msk [vmem:[#allocation2 + $0xc8] sm:$0xff] %vm237_vm0, %v459_v55  ;;  %v465_v58 = vsel %vm464_vm6, %v457_v56, %v459_v55 }
  0xda   : > { %613 = vmatpush1.bf16.msra.mxu0 %v388_v46  ;;  %954 = vmatpush1.bf16.msra.mxu1 %v388_v46 }
  0xdb   : > { %614 = vmatprep.subr.bf16.mxu0 %v543_v57  ;;  %939 = vmatprep.subr.bf16.mxu1 %v543_v57 }
  0xdc   : > { %v463_v59 = vpop.permute.xlu1 %462  ;;  %v461_v60 = vpop.permute.xlu0 %460  ;;  %v545_v61 = vld [vmem:[#allocation2 + $0xb8] sm:$0xff] }
  0xdd   : > { %474 = vst.msk [vmem:[#allocation2 + $0xd8] sm:$0xff] %vm237_vm0, %v463_v59  ;;  %v466_v62 = vsel %vm464_vm6, %v461_v60, %v463_v59 }
  0xde   : > { %615 = vmatpush1.bf16.msra.mxu0 %v426_v50  ;;  %955 = vmatpush1.bf16.msra.mxu1 %v426_v50 }
  0xdf   : > { %616 = vmatprep.subr.bf16.mxu0 %v545_v61  ;;  %940 = vmatprep.subr.bf16.mxu1 %v545_v61 }
  0xe0   : > { %v498_v63 = vpop.permute.xlu1 %497  ;;  %v496_v0 = vpop.permute.xlu0 %495  ;;  %v547_v1 = vld [vmem:[#allocation2 + $0xc8] sm:$0xff] }
  0xe1   : > { %511 = vst.msk [vmem:[#allocation2 + $0xe8] sm:$0xff] %vm237_vm0, %v498_v63  ;;  %v504_v2 = vsel %vm503_vm7, %v496_v0, %v498_v63 }
  0xe2   : > { %617 = vmatpush1.bf16.msra.mxu0 %v427_v54  ;;  %956 = vmatpush1.bf16.msra.mxu1 %v427_v54 }
  0xe3   : > { %618 = vmatprep.subr.bf16.mxu0 %v547_v1  ;;  %941 = vmatprep.subr.bf16.mxu1 %v547_v1 }
  0xe4   : > { %v502_v3 = vpop.permute.xlu1 %501  ;;  %v500_v4 = vpop.permute.xlu0 %499  ;;  %v549_v5 = vld [vmem:[#allocation2 + $0xd8] sm:$0xff] }
  0xe5   : > { %513 = vst.msk [vmem:[#allocation2 + $0xf8] sm:$0xff] %vm237_vm0, %v502_v3  ;;  %v505_v6 = vsel %vm503_vm7, %v500_v4, %v502_v3 }
  0xe6   : > { %619 = vmatpush1.bf16.msra.mxu0 %v465_v58  ;;  %957 = vmatpush1.bf16.msra.mxu1 %v465_v58 }
  0xe7   : > { %620 = vmatprep.subr.bf16.mxu0 %v549_v5  ;;  %942 = vmatprep.subr.bf16.mxu1 %v549_v5 }
  0xe8   : > { %v551_v7 = vld [vmem:[#allocation2 + $0xe8] sm:$0xff] }
  0xea   : > { %621 = vmatpush1.bf16.msra.mxu0 %v466_v62  ;;  %958 = vmatpush1.bf16.msra.mxu1 %v466_v62 }
  0xeb   : > { %622 = vmatprep.subr.bf16.mxu0 %v551_v7  ;;  %943 = vmatprep.subr.bf16.mxu1 %v551_v7 }
  0xec   : > { %v553_v8 = vld [vmem:[#allocation2 + $0xf8] sm:$0xff] }
  0xee   : > { %623 = vmatpush1.bf16.msra.mxu0 %v504_v2  ;;  %959 = vmatpush1.bf16.msra.mxu1 %v504_v2 }
  0xef   : > { %624 = vmatprep.subr.bf16.mxu0 %v553_v8  ;;  %944 = vmatprep.subr.bf16.mxu1 %v553_v8 }
  0xf2   : > { %625 = vmatpush1.bf16.msra.mxu0 %v505_v6  ;;  %960 = vmatpush1.bf16.msra.mxu1 %v505_v6 }
  0xf5   : > { %627 = vmatmul.mubr.bf16.vlgmr.msra.gmra.mrb[0].mxu0 %v1048_v9  ;;  %643 = vmatmul.mubr.bf16.vlgmr.msra.gmra.mrb[0].mxu1 %v1051_v10  ;;  %v702_v15 = vpop.permute.xlu0 %701  ;;  %v707_v16 = vpop.permute.xlu1 %706 }
  0xf6   : > { %634 = vmatprep.mubr.bf16.mxu0 %v1054_v11  ;;  %652 = vmatprep.mubr.bf16.mxu1 %v1056_v12 }
  0xf9   : > { %v717_v17 = vpop.permute.xlu0 %716  ;;  %v712_v18 = vpop.permute.xlu1 %711 }
  0xfd   : > { %635 = vmatmul.mubr.bf16.gmra.mrb[4].mxu0 %v1058_v13  ;;  %653 = vmatmul.mubr.bf16.gmra.mrb[4].mxu1 %v1059_v14  ;;  %v679_v19 = vpop.permute.xlu0 %678  ;;  %v674_v20 = vpop.permute.xlu1 %673 }
 0x101   : > { %v689_v35 = vpop.permute.xlu0 %688  ;;  %v684_v36 = vpop.permute.xlu1 %683 }
 0x1c8   : > { %v628_v21 = vpop.f32.mrb[0].mxu0  ;;  %v644_v22 = vpop.f32.mrb[0].mxu1 }
 0x1c9   : > { %v719_v23 = vadd.f32 %v702_v15, %v644_v22  ;;  %v691_v24 = vadd.f32 %v674_v20, %v628_v21  ;;  %v630_v25 = vpop.f32.mrb[1].mxu0  ;;  %v646_v26 = vpop.f32.mrb[1].mxu1 }
 0x1ca   : > { %v720_v27 = vadd.f32 %v702_v15, %v646_v26  ;;  %v631_v28 = vpop.f32.mrb[2].mxu0  ;;  %v648_v29 = vpop.f32.mrb[2].mxu1 }
 0x1cb   : > { %695 = vst [vmem:[%s1348_s18] sm:$0xff] %v691_v24  ;;  %v692_v30 = vadd.f32 %v679_v19, %v631_v28  ;;  %735 = vrot.lane.b32.xlu1 %v719_v23, %s1183_s19  ;;  %v650_v31 = vpop.f32.mrb[3].mxu1  ;;  %v633_v32 = vpop.f32.mrb[3].mxu0  ;;  %v721_v33 = vadd.f32 %v707_v16, %v648_v29 }
 0x1cc   : > { %737 = vrot.lane.b32.xlu0 %v720_v27, %s1183_s19  ;;  %v722_v34 = vadd.f32 %v707_v16, %v650_v31 }
 0x1cd   : > { %696 = vst [vmem:[%s1348_s18 + $0x8] sm:$0xff] %v692_v30 }
 0x1cf   : > { %739 = vrot.lane.b32.xlu1 %v721_v33, %s1183_s19 }
 0x1d0   : > { %741 = vrot.lane.b32.xlu0 %v722_v34, %s1183_s19  ;;  %v636_v37 = vpop.f32.mrb[4].mxu0  ;;  %v654_v38 = vpop.f32.mrb[4].mxu1 }
 0x1d1   : > { %v693_v39 = vadd.f32 %v684_v36, %v636_v37  ;;  %v723_v40 = vadd.f32 %v712_v18, %v654_v38  ;;  %v638_v41 = vpop.f32.mrb[5].mxu0  ;;  %v656_v42 = vpop.f32.mrb[5].mxu1 }
 0x1d2   : > { %v724_v43 = vadd.f32 %v712_v18, %v656_v42  ;;  %v639_v44 = vpop.f32.mrb[6].mxu0  ;;  %v658_v45 = vpop.f32.mrb[6].mxu1 }
 0x1d3   : > { %697 = vst [vmem:[%s1348_s18 + $0x10] sm:$0xff] %v693_v39  ;;  %v694_v46 = vadd.f32 %v689_v35, %v639_v44  ;;  %743 = vrot.lane.b32.xlu1 %v723_v40, %s1183_s19  ;;  %v660_v47 = vpop.f32.mrb[7].mxu1  ;;  %v641_v48 = vpop.f32.mrb[7].mxu0  ;;  %v725_v49 = vadd.f32 %v717_v17, %v658_v45 }
 0x1d4   : > { %745 = vrot.lane.b32.xlu0 %v724_v43, %s1183_s19  ;;  %v726_v50 = vadd.f32 %v717_v17, %v660_v47 }
 0x1d5   : > { %698 = vst [vmem:[%s1348_s18 + $0x18] sm:$0xff] %v694_v46 }
 0x1d7   : > { %747 = vrot.lane.b32.xlu1 %v725_v49, %s1183_s19 }
 0x1d8   : > { %749 = vrot.lane.b32.xlu0 %v726_v50, %s1183_s19 }
 0x23d   : > { %v736_v51 = vpop.permute.xlu1 %735 }
 0x23e   : > { %v738_v52 = vpop.permute.xlu0 %737 }
 0x23f   : > { %v752_v53 = vsel %vm751_vm8, %v736_v51, %v738_v52 }
 0x240   : > { %760 = vst [vmem:[%s1348_s18 + $0x20] sm:$0xff] %v752_v53 }
 0x241   : > { %v740_v54 = vpop.permute.xlu1 %739 }
 0x242   : > { %v742_v55 = vpop.permute.xlu0 %741 }
 0x243   : > { %v753_v56 = vsel %vm751_vm8, %v740_v54, %v742_v55 }
 0x244   : > { %761 = vst [vmem:[%s1348_s18 + $0x28] sm:$0xff] %v753_v56 }
 0x245   : > { %v744_v57 = vpop.permute.xlu1 %743 }
 0x246   : > { %v746_v58 = vpop.permute.xlu0 %745 }
 0x247   : > { %v754_v59 = vsel %vm751_vm8, %v744_v57, %v746_v58 }
 0x248   : > { %762 = vst [vmem:[%s1348_s18 + $0x30] sm:$0xff] %v754_v59 }
 0x249   : > { %v748_v60 = vpop.permute.xlu1 %747 }
 0x24a   : > { %v750_v61 = vpop.permute.xlu0 %749 }
 0x24b   : > { %v755_v62 = vsel %vm751_vm8, %v748_v60, %v750_v61 }
 0x24c   : > { %763 = vst [vmem:[%s1348_s18 + $0x38] sm:$0xff] %v755_v62 }
 0x24d   : > { %1101 = shalt.err (!%p1098_p6)
}
 0x24e   : > { %s1102_s29 = scalar_lea.hbm %s1375_s5, 1024  ;;  %s1106_s9 = scalar_lea.hbm %s1430_s3, 2048 }
 0x24f   : > { %p1103_p7 = scmp.ne.s32.totalorder %s1375_s5, %s1102_s29  ;;  %p1107_p0 = scmp.lt.u32.totalorder %s1375_s5, %s1430_s3 }
 0x250   : > { %p1108_p2 = scmp.lt.u32.totalorder %s1106_s9, %s1102_s29  ;;  %p1110_p8 = scmp.lt.u32.totalorder %s1102_s29, %s1375_s5 }
 0x251   : > { %p1104_p9 = pnand %p1103_p7, %p1442_p10 }
 0x252   : > { %p1109_p4 = por %p1108_p2, %p1107_p0 }
 0x253   : > { %p1105_p12 = pneg %p1104_p9 }
 0x254   : > { %p1111_p11 = por %p1110_p8, %p1109_p4 }
 0x256   : > { %p1112_p13 = pnand %p1111_p11, %p1105_p12 }
 0x258   : > { %1115 = shalt.err (!%p1112_p13)
}
 0x259   : > { %s1185_s18 = smov 128   ;;  %s1186_s19 = smov 8  }
 0x25a   : > { %965 = dma.vmem_to_hbm [thread:$0]  (%p1442_p10), %s1370_s21, 1024, %s1375_s5, %s1381_s15, %s1185_s18, %s1185_s18, %s1186_s19  }
 0x25b PF: > { %p977_p1 = scmp.ge.s32.totalorder %s1170_s17, 2  ;;  %s794_s23 = sand.u32 1, %s1150_s12  }
 0x25c   : > { %p1443_p3 = scmp.ne.s32.totalorder %s1436_s24, 0  ;;  %s795_s28 = scalar_lea.sflag [#allocation5], %s794_s23 }
 0x25e   : > { %p972_p5 = pnand %p977_p1, %p1443_p3 }
 0x260   : > { %1145 = dma.done.wait (!%p972_p5), %s795_s28, 1024  }
 0x261   : > { %1147 = vsyncadd (!%p972_p5), %s795_s28, 4294966272  ;;  %s17_s17 = sadd.s32 1, %s1170_s17   ;;  %s1444_s12 = smov %s1154_s13 }
 0x262   : > { %p14_p6 = scmp.ge.s32.totalorder %s17_s17, 4   ;;  %s1445_s13 = smov %s1158_s14 }
 0x263   : > { %s1446_s14 = smov %s1260_s25  ;;  %s1447_s15 = smov %s1166_s16 }
 0x264   : > { %s1448_s16 = smov %s1450_s20  ;;  %16 = sbr.rel (!%p14_p6) target bundleno = 5 (0x5), region = 72 }
 0x26b   :  { %800 = vsyncpa [#allocation4], 1 }
 0x26c   :  { %802 = vsyncpa [#allocation4 + $0x1], 1 }
 0x26d   :  { %803 = vsyncpa [#allocation5], 1 }
 0x26e   :  { %805 = vsyncpa [#allocation5 + $0x1], 1 }

</bundles_post_ra>
